<compile_context>
chip_gen: v5e
topology: v5e:2x2
jax: 0.10.0
libtpu: 0.0.40
codegen_flags: <defaults>
</compile_context>

<pallas_src>
import jax
import jax.numpy as jnp
from jax.experimental import pallas as pl
from jax.experimental.pallas import tpu as pltpu


# ---------------------------------------------------------------------------
# Kernel 1: t = tanh((X @ W^T) * bn_scale + bn_shift)   on flattened (B*N, D) rows
# ---------------------------------------------------------------------------
def linear_bn_tanh_kernel(x_ref, wt_ref, scale_ref, shift_ref, t_ref):
    # x_ref: (TR, D), wt_ref: (D, M), scale/shift: (TR, 1), t_ref: (TR, M)
    z = jnp.dot(x_ref[...], wt_ref[...], preferred_element_type=jnp.float32)
    t_ref[...] = jnp.tanh(z * scale_ref[...] + shift_ref[...]).astype(t_ref.dtype)


# ---------------------------------------------------------------------------
# Kernel 2: dot-product attention pooling over TB bags per grid step
# ---------------------------------------------------------------------------
def atten_pool_kernel(t_ref, sw2_ref, ips_ref, out_ref):
    # t_ref: (TB, N, M), sw2_ref: (H, N), ips_ref: (1, N), out_ref: (TB, H, N)
    t = t_ref[...].astype(jnp.float32)                     # (TB, N, M)
    TB, N, M = t.shape
    H = sw2_ref.shape[0]

    # rowsum-minus-diagonal of the per-head Gram matrices, without forming them:
    colsum = jnp.sum(t, axis=2, keepdims=True)             # (TB, N, 1)
    gt = t * (colsum - t) * (1.0 / N)                      # (TB, N, M)

    sw2 = jnp.broadcast_to(sw2_ref[...][None, :, :], (TB, H, N))
    atten = jnp.einsum('bhn,bnm->bhm', sw2, gt,
                       preferred_element_type=jnp.float32)  # (TB, H, M)

    # softmax over the OUT_CHAN (m, lane) axis
    m_ = jnp.max(atten, axis=2, keepdims=True)
    e = jnp.exp(atten - m_)
    att = e * pl.reciprocal(jnp.sum(e, axis=2, keepdims=True), approx=False)

    # pooled[b,h,n] = sum_m att[b,h,m] * t[b,n,m]; in-place scaling applied afterwards
    pooled = jnp.einsum('bhm,bnm->bhn', att, t,
                        preferred_element_type=jnp.float32)  # (TB, H, N)
    out_ref[...] = (pooled * ips_ref[...][None, :, :]).astype(out_ref.dtype)


# ---------------------------------------------------------------------------
# Wrapper
# ---------------------------------------------------------------------------
def _largest_divisor_leq(n, cap):
    cap = max(1, min(n, cap))
    for d in range(cap, 0, -1):
        if n % d == 0:
            return d
    return 1


def _row_tile(rows):
    if rows <= 1024:
        return rows
    for d in range(1024, 7, -1):
        if rows % d == 0 and d % 8 == 0:
            return d
    return rows


def conv_atten_block(x, w_lin, bn_gamma, bn_beta, bn_mean, bn_var, sw, ips, eps=1e-5):
    """x: (B, N, D); w_lin: (M, D) [PyTorch Linear]; bn_*: (N,); sw: (H, N); ips: (N,).
       Returns (B, H, N) matching ConvAttenBlock.forward in eval mode."""
    B, N, D = x.shape
    M = w_lin.shape[0]
    H = sw.shape[0]

    # Fold eval-mode BatchNorm1d (channel = in_chan = N) into a per-row affine.
    scale = bn_gamma * jax.lax.rsqrt(bn_var + eps)          # (N,)
    shift = bn_beta - bn_mean * scale                       # (N,)

    wt = jnp.transpose(w_lin)                               # (D, M)
    xf = x.reshape(B * N, D)                                # rows ordered b-major, n-minor
    scale_r = jnp.tile(scale, B).reshape(B * N, 1)
    shift_r = jnp.tile(shift, B).reshape(B * N, 1)

    R = B * N
    TR = _row_tile(R)

    t = pl.pallas_call(
        linear_bn_tanh_kernel,
        out_shape=jax.ShapeDtypeStruct((R, M), x.dtype),
        grid_spec=pltpu.PrefetchScalarGridSpec(
            num_scalar_prefetch=0,
            grid=(R // TR,),
            in_specs=[
                pl.BlockSpec((TR, D), lambda r: (r, 0)),     # X rows
                pl.BlockSpec((D, M), lambda r: (0, 0)),      # W^T (constant)
                pl.BlockSpec((TR, 1), lambda r: (r, 0)),     # bn scale per row
                pl.BlockSpec((TR, 1), lambda r: (r, 0)),     # bn shift per row
            ],
            out_specs=pl.BlockSpec((TR, M), lambda r: (r, 0)),
        ),
        compiler_params=pltpu.CompilerParams(dimension_semantics=("parallel",)),
    )(xf, wt, scale_r, shift_r)

    t3 = t.reshape(B, N, M)                                  # free metadata reshape in XLA
    sw2 = sw * sw                                            # (H, N): heads enter only squared
    ips_row = ips.reshape(1, N)

    # Batch TB bags per grid step; cap the per-block t footprint (~2 MiB).
    bytes_per_bag = 4 * N * M
    cap = max(1, (2 * 1024 * 1024) // max(1, bytes_per_bag))
    TB = _largest_divisor_leq(B, cap)

    out = pl.pallas_call(
        atten_pool_kernel,
        out_shape=jax.ShapeDtypeStruct((B, H, N), x.dtype),
        grid_spec=pltpu.PrefetchScalarGridSpec(
            num_scalar_prefetch=0,
            grid=(B // TB,),
            in_specs=[
                pl.BlockSpec((TB, N, M), lambda b: (b, 0, 0)),   # tanh features
                pl.BlockSpec((H, N), lambda b: (0, 0)),          # squared head scalings
                pl.BlockSpec((1, N), lambda b: (0, 0)),          # in-place scaling
            ],
            out_specs=pl.BlockSpec((TB, H, N), lambda b: (b, 0, 0)),
        ),
        compiler_params=pltpu.CompilerParams(dimension_semantics=("parallel",)),
    )(t3, sw2, ips_row)

    return out


# ---------------------------------------------------------------------------
# Pure-JAX reference: direct translation of the PyTorch forward (eval mode)
# ---------------------------------------------------------------------------
def _reference(x, w_lin, bn_gamma, bn_beta, bn_mean, bn_var, sw, ips, eps=1e-5):
    B, N, D = x.shape
    z = jnp.einsum('bnd,md->bnm', x, w_lin)                  # Linear(D, M, bias=False)
    scale = bn_gamma / jnp.sqrt(bn_var + eps)
    shift = bn_beta - bn_mean * scale
    z = jnp.tanh(z * scale[None, :, None] + shift[None, :, None])   # BN(eval) + Tanh
    z_ = jnp.transpose(z, (0, 2, 1))                         # (B, M, N)
    heads = []
    for h in range(sw.shape[0]):
        s = z_ * sw[h][None, None, :]
        w_ = jnp.einsum('bik,bjk->bij', s, s) / N            # bmm(s, s^T) / in_chan
        rowsum = jnp.sum(w_, axis=2) - jnp.diagonal(w_, axis1=1, axis2=2)
        heads.append(rowsum[:, :, None])
    atten = jnp.concatenate(heads, axis=2)                   # (B, M, H)
    att = jax.nn.softmax(atten, axis=1)
    z__ = z_ * ips[None, None, :]
    return jnp.einsum('bmh,bmn->bhn', att, z__)              # bmm(att^T, z__)


if __name__ == "__main__":
    B, IN_CHAN, D, OUT_CHAN, HEADS = 2, 4, 16, 32, 4

    key = jax.random.PRNGKey(0)
    kx, kw, kg, kb, km, kv, ks = jax.random.split(key, 7)

    x = jax.random.normal(kx, (B, IN_CHAN, D), dtype=jnp.float32)
    w_lin = jax.random.normal(kw, (OUT_CHAN, D), dtype=jnp.float32) * (1.0 / jnp.sqrt(D))
    bn_gamma = 1.0 + 0.1 * jax.random.normal(kg, (IN_CHAN,), dtype=jnp.float32)
    bn_beta = 0.1 * jax.random.normal(kb, (IN_CHAN,), dtype=jnp.float32)
    bn_mean = 0.1 * jax.random.normal(km, (IN_CHAN,), dtype=jnp.float32)
    bn_var = 0.5 + jax.nn.sigmoid(jax.random.normal(kv, (IN_CHAN,), dtype=jnp.float32))
    sw = jax.random.normal(ks, (HEADS, IN_CHAN), dtype=jnp.float32)   # nn.init.normal_
    ips = jnp.full((IN_CHAN,), 1.0 / IN_CHAN, dtype=jnp.float32)      # nn.init.constant_(1/D)

    out = conv_atten_block(x, w_lin, bn_gamma, bn_beta, bn_mean, bn_var, sw, ips)
    out = jax.block_until_ready(out)

    ref = _reference(x, w_lin, bn_gamma, bn_beta, bn_mean, bn_var, sw, ips)
    assert out.shape == (B, HEADS, IN_CHAN), out.shape
    assert jnp.allclose(out, ref, atol=1e-4, rtol=1e-4), "mismatch vs reference"

    print("KERNEL_OK")
</pallas_src>

<mosaic_0001>
module attributes {stable_mosaic.version = 11 : i64} {
  func.func @linear_bn_tanh_kernel(%arg0: i32, %arg1: memref<8x16xf32, #tpu.memory_space<vmem>>, %arg2: memref<16x32xf32, #tpu.memory_space<vmem>>, %arg3: memref<8x1xf32, #tpu.memory_space<vmem>>, %arg4: memref<8x1xf32, #tpu.memory_space<vmem>>, %arg5: memref<8x32xf32, #tpu.memory_space<vmem>>) attributes {dimension_semantics = [#tpu.dimension_semantics<parallel>], iteration_bounds = array<i64: 1>, scalar_prefetch = 0 : i64, scratch_operands = 0 : i64, tpu.core_type = #tpu.core_type<tc>, window_params = [{transform_indices = @transform_0, window_bounds = array<i64: 8, 16>}, {pipeline_mode = #tpu.pipeline_mode<synchronous>, transform_indices = @transform_1, window_bounds = array<i64: 16, 32>}, {transform_indices = @transform_2, window_bounds = array<i64: 8, 1>}, {transform_indices = @transform_3, window_bounds = array<i64: 8, 1>}, {transform_indices = @transform_4, window_bounds = array<i64: 8, 32>}]} {
    %c0 = arith.constant 0 : index
    %c0_0 = arith.constant 0 : index
    %0 = vector.load %arg1[%c0, %c0_0] : memref<8x16xf32, #tpu.memory_space<vmem>>, vector<8x16xf32>
    %c0_1 = arith.constant 0 : index
    %c0_2 = arith.constant 0 : index
    %1 = vector.load %arg2[%c0_1, %c0_2] : memref<16x32xf32, #tpu.memory_space<vmem>>, vector<16x32xf32>
    %cst = arith.constant dense<0.000000e+00> : vector<8x32xf32>
    %2 = tpu.matmul %0, %1, %cst {dimension_numbers = #tpu.dot_dimension_numbers<[1], [0], [0], [1], [0, 0, 1, 1], [], []>} : vector<8x16xf32>, vector<16x32xf32>, vector<8x32xf32> -> vector<8x32xf32>
    %c0_3 = arith.constant 0 : index
    %c0_4 = arith.constant 0 : index
    %3 = vector.load %arg3[%c0_3, %c0_4] : memref<8x1xf32, #tpu.memory_space<vmem>>, vector<8x1xf32>
    %4 = vector.broadcast %3 : vector<8x1xf32> to vector<8x32xf32>
    %5 = arith.mulf %2, %4 : vector<8x32xf32>
    %c0_5 = arith.constant 0 : index
    %c0_6 = arith.constant 0 : index
    %6 = vector.load %arg4[%c0_5, %c0_6] : memref<8x1xf32, #tpu.memory_space<vmem>>, vector<8x1xf32>
    %7 = vector.broadcast %6 : vector<8x1xf32> to vector<8x32xf32>
    %8 = arith.addf %5, %7 : vector<8x32xf32>
    %9 = math.tanh %8 : vector<8x32xf32>
    %c0_7 = arith.constant 0 : index
    %c0_8 = arith.constant 0 : index
    %10 = vector.load %arg5[%c0_7, %c0_8] : memref<8x32xf32, #tpu.memory_space<vmem>>, vector<8x32xf32>
    tpu.vector_store %arg5[%c0_7, %c0_8], %9 {strides = array<i32>} : memref<8x32xf32, #tpu.memory_space<vmem>>, vector<8x32xf32>,
    return
  }
  func.func @transform_0(%arg0: i32) -> (i32, i32) {
    %c0_i32 = arith.constant 0 : i32
    %c0_i32_0 = arith.constant 0 : i32
    return %arg0, %c0_i32 : i32, i32
  }
  func.func @transform_1(%arg0: i32) -> (i32, i32) {
    %c0_i32 = arith.constant 0 : i32
    %c0_i32_0 = arith.constant 0 : i32
    %c0_i32_1 = arith.constant 0 : i32
    return %c0_i32, %c0_i32_0 : i32, i32
  }
  func.func @transform_2(%arg0: i32) -> (i32, i32) {
    %c0_i32 = arith.constant 0 : i32
    %c0_i32_0 = arith.constant 0 : i32
    return %arg0, %c0_i32 : i32, i32
  }
  func.func @transform_3(%arg0: i32) -> (i32, i32) {
    %c0_i32 = arith.constant 0 : i32
    %c0_i32_0 = arith.constant 0 : i32
    return %arg0, %c0_i32 : i32, i32
  }
  func.func @transform_4(%arg0: i32) -> (i32, i32) {
    %c0_i32 = arith.constant 0 : i32
    %c0_i32_0 = arith.constant 0 : i32
    return %arg0, %c0_i32 : i32, i32
  }
}

</mosaic_0001>

<bundles_post_ra>
// kernel: tpu_custom_call.1
= control target key start
LH: loop header
LB: loop body
LE: loop exit
PB: predicated region body
PF: predicated region fallthrough
CT: control target
= control target key end

     0   :  { %9 = vsyncpa [#allocation3], 0  ;;  %s198_s0 = inlined_call_operand.hbm [shape: f32[8,16], index: 0, kind: input, shape index: {}]   ;;  %s199_s1 = inlined_call_operand.vmem [shape: f32[16,32], index: 1, kind: input, shape index: {}]   ;;  %s200_s2 = inlined_call_operand.vmem [shape: f32[8,1], index: 2, kind: input, shape index: {}]   ;;  %s201_s3 = inlined_call_operand.vmem [shape: f32[8,1], index: 3, kind: input, shape index: {}]   ;;  %s202_s4 = inlined_call_operand.hbm [shape: f32[8,32], index: 4, kind: output, shape index: {}]  }
   0x1   :  { %10 = vsyncpa [#allocation4], 0  ;;  %s16_s17 = sshll.u32 %s198_s0, 4  ;;  %s152_s18 = smov [#allocation2]   ;;  %s17_s17 = int_to_ptr.hbm [resolvable:$true] %s16_s17 }
   0x2   :  { %s18_s19 = sshll.u32 %s152_s18, 4  ;;  %s19_s19 = int_to_ptr.vmem [resolvable:$true] %s18_s19 }
   0x3   :  { %21 = dma.hbm_to_vmem [thread:$0]  %s17_s17, 128, %s19_s19, [#allocation3]  }
   0x4   :  { %148 = dma.done.wait [#allocation3], 128  }
   0x5   :  { %149 = vsyncadd [#allocation3], 4294967168  ;;  %v153_v0 = vmov 0   ;;  %v59_v1 = vld [vmem:[%s200_s2] sm:$0xff]  ;;  %v34_v2 = vld [vmem:[%s199_s1 + $0x8] sm:$0xff]  ;;  %vm35_vm0 = vcmask 130048  }
   0x6   :  { %97 = vset.pattern.permute.xlu0 %v153_v0  ;;  %v33_v3 = vld [vmem:[%s199_s1] sm:$0xff]  ;;  %53 = vmatpush.msra.mxu0 %v34_v2  ;;  %s154_s2 = smov [#allocation5]   ;;  %s83_s29 = sshll.u32 %s202_s4, 4  ;;  %vm74_vm1 = vcmask 261120   ;;  %s84_s29 = int_to_ptr.hbm [resolvable:$true] %s83_s29 }
   0x7   :  { %62 = vperm.xlu0 %97, %v59_v1   ;;  %v32_v4 = vld [vmem:[#allocation2] sm:$0xff]  ;;  %s81_s27 = sshll.u32 %s154_s2, 4  ;;  %s82_s27 = int_to_ptr.vmem [resolvable:$true] %s81_s27 }
   0x8   :  { %54 = vmatpush.msra.mxu0 %v33_v3  ;;  %v66_v5 = vld [vmem:[%s201_s3] sm:$0xff] }
   0x9   :  { %93 = vmatmul.msk.f32.vlgmr.msra.gmra.mxu0 %vm35_vm0, %v32_v4 }
   0xf   :  { %69 = vperm.xlu0 %97, %v66_v5  }
  0x79   :  { %v63_v6 = vpop.permute.xlu0 %62 }
  0x81   :  { %v70_v9 = vpop.permute.xlu0 %69 }
  0x86   :  { %v56_v7 = vpop.f32.mrf.mxu0 }
  0x87   :  { %v65_v8 = vmul.f32 %v63_v6, %v56_v7 }
  0x89   :  { %v72_v10 = vadd.f32 %v70_v9, %v65_v8 }
  0x8b   :  { %98 = vtanh.f32 %v72_v10 }
  0x91   :  { %v99_v11 = vpop.eup %98 }
  0x92   :  { %75 = vst.msk [vmem:[#allocation5] sm:$0xff] %vm74_vm1, %v99_v11 }
  0x93   :  { %86 = dma.vmem_to_hbm [thread:$0]  %s82_s27, 128, %s84_s29, [#allocation4]  }
  0x94   :  { %150 = dma.done.wait [#allocation4], 128  }
  0x95   :  { %151 = vsyncadd [#allocation4], 4294967168 }
  0x96   :  { %91 = vsyncpa [#allocation3], 1 }
  0x97   :  { %92 = vsyncpa [#allocation4], 1 }

</bundles_post_ra>
